<compile_context>
chip_gen: v5e
topology: v5e:2x2
jax: 0.10.0
libtpu: 0.0.40
codegen_flags: <defaults>
</compile_context>

<pallas_src>
import functools

import jax
import jax.numpy as jnp
from jax.experimental import pallas as pl
from jax.experimental.pallas import tpu as pltpu

KERNEL_SIZE = 15
WEIGHT_FACTOR = 2.0
EPS = 1e-6

_VMEM_LIMIT_BYTES = 32 * 1024 * 1024      # safe on v5e/v6e/v7x
_INPUT_VMEM_BUDGET = 8 * 1024 * 1024      # double-buffered pred+target blocks


def _cdiv(a, b):
    return -(-a // b)


def _round_up(x, m):
    return ((x + m - 1) // m) * m


def _reflect_indices(n, pad):
    """PyTorch 'reflect' (no edge repeat) indices for a padded axis."""
    idx = jnp.arange(-pad, n + pad)
    idx = jnp.abs(idx)
    idx = jnp.where(idx >= n, 2 * (n - 1) - idx, idx)
    return idx


def _pool_matrix(n, k):
    """Dense (n, n) matrix implementing reflect-pad + 1D box average (stride 1)."""
    pad = k // 2
    ridx = _reflect_indices(n, pad)                                     # (n+2p,)
    P = (ridx[:, None] == jnp.arange(n)[None, :]).astype(jnp.float32)   # (n+2p, n)
    m = jnp.arange(n + 2 * pad)
    i = jnp.arange(n)
    A = ((m[None, :] >= i[:, None]) & (m[None, :] < i[:, None] + k)
         ).astype(jnp.float32)                                          # (n, n+2p)
    return (A @ P) / float(k)                                           # (n, n)


def _pack_partials(s1, s2, s3, out_ref):
    """Write the 3 scalars into a lane-dense, tile-aligned (1, 8, 128) block."""
    lane = jax.lax.broadcasted_iota(jnp.int32, out_ref.shape, 2)
    out_ref[...] = jnp.where(lane == 0, s1,
                             jnp.where(lane == 1, s2,
                                       jnp.where(lane == 2, s3, 0.0)))


def _mask_rows(rows, tb, n_valid):
    """Zero the per-row (tb, 1) partial sums of zero-padded rows."""
    i = pl.program_id(0)
    ridx = i * tb + jax.lax.broadcasted_iota(jnp.int32, (tb, 1), 0)
    valid = (ridx < n_valid).astype(jnp.float32)
    return [r * valid for r in rows]


# --------------------------------------------------------------------------
# Dense path: one (HW, HW) kron(M_row, M_col)^T operator, small images only.
# --------------------------------------------------------------------------
def _awl_dense_kernel(m_ref, pred_ref, target_ref, out_ref, *, tb, n_valid, masked):
    x = target_ref[...].astype(jnp.float32)       # (tb, HW)
    p = pred_ref[...].astype(jnp.float32)
    m = m_ref[...]                                # (HW, HW) bf16

    # local mean = reflect-pad + kxk box filter as one MXU matmul (bf16 operands)
    mean = jnp.dot(x.astype(jnp.bfloat16), m, preferred_element_type=jnp.float32)
    d = x - mean
    # exact module semantics: pool((x - mean)^2), not pool(x^2) - mean^2
    var = jnp.dot((d * d).astype(jnp.bfloat16), m, preferred_element_type=jnp.float32)
    std = jnp.sqrt(jnp.maximum(var, 0.0) + EPS)
    base = jnp.abs(p - x)

    rows = [jnp.sum(base, axis=1, keepdims=True),
            jnp.sum(base * std, axis=1, keepdims=True),
            jnp.sum(std, axis=1, keepdims=True)]
    if masked:
        rows = _mask_rows(rows, tb, n_valid)
    _pack_partials(jnp.sum(rows[0]), jnp.sum(rows[1]), jnp.sum(rows[2]), out_ref)


# --------------------------------------------------------------------------
# Separable path: pool W with M_col, then H with M_row (two batched matmuls).
# --------------------------------------------------------------------------
def _awl_sep_kernel(mr_ref, mc_ref, pred_ref, target_ref, out_ref, *,
                    tb, n_valid, masked):
    x = target_ref[...].astype(jnp.float32)       # (tb, H, W)
    p = pred_ref[...].astype(jnp.float32)
    H, W = x.shape[1], x.shape[2]
    mr = jnp.broadcast_to(mr_ref[...], (tb, H, H))   # bf16, mr[b,i,h] = M_row[i,h]
    mc = jnp.broadcast_to(mc_ref[...], (tb, W, W))   # bf16, mc[b,j,w] = M_col[j,w]

    def pool(v):                                   # (tb,H,W) f32 -> (tb,H,W) f32
        y = jnp.einsum('bhw,bjw->bhj', v.astype(jnp.bfloat16), mc,
                       preferred_element_type=jnp.float32)
        return jnp.einsum('bih,bhj->bij', mr, y.astype(jnp.bfloat16),
                          preferred_element_type=jnp.float32)

    mean = pool(x)
    d = x - mean
    var = pool(d * d)
    std = jnp.sqrt(jnp.maximum(var, 0.0) + EPS)
    base = jnp.abs(p - x)

    def rsum(v):                                   # (tb,H,W) -> (tb,1)
        return jnp.sum(jnp.sum(v, axis=2), axis=1, keepdims=True)

    rows = [rsum(base), rsum(base * std), rsum(std)]
    if masked:
        rows = _mask_rows(rows, tb, n_valid)
    _pack_partials(jnp.sum(rows[0]), jnp.sum(rows[1]), jnp.sum(rows[2]), out_ref)


# --------------------------------------------------------------------------
# Wrapper
# --------------------------------------------------------------------------
def adaptive_weighted_loss(pred, target, kernel_size=KERNEL_SIZE,
                           weight_factor=WEIGHT_FACTOR, block_rows=256,
                           dense_max_hw=512):
    assert pred.shape == target.shape and pred.ndim == 4
    B, C, H, W = pred.shape
    pad = kernel_size // 2
    assert pad < H and pad < W, "reflect pad needs pad < spatial dim"

    # keep native dtype (f32/bf16/f16) — no extra HBM pass for a cast
    if jnp.dtype(pred.dtype) not in (jnp.dtype(jnp.float32), jnp.dtype(jnp.bfloat16),
                                     jnp.dtype(jnp.float16)):
        pred = pred.astype(jnp.float32)
    if jnp.dtype(target.dtype) not in (jnp.dtype(jnp.float32), jnp.dtype(jnp.bfloat16),
                                       jnp.dtype(jnp.float16)):
        target = target.astype(jnp.float32)

    HW = H * W
    N = B * C
    itemsize = jnp.dtype(pred.dtype).itemsize
    row_align = {4: 8, 2: 16, 1: 32}.get(itemsize, 8)   # sublane packing

    use_dense = HW <= dense_max_hw

    m_row = _pool_matrix(H, kernel_size)                # (H, H) f32
    m_col = _pool_matrix(W, kernel_size)                # (W, W) f32

    # Cap block rows so double-buffered pred+target blocks stay within budget.
    lane_bytes = _round_up(HW if use_dense else W, 128) * itemsize
    bytes_per_row = lane_bytes if use_dense else H * lane_bytes
    tb_cap = max(row_align,
                 ((_INPUT_VMEM_BUDGET // (4 * bytes_per_row)) // row_align) * row_align)
    block_rows = max(row_align, min(block_rows, tb_cap))

    # >= 2 blocks whenever N allows (v7x megacore), minimal tail padding.
    nblk = max(_cdiv(N, block_rows), 2 if N > row_align else 1)
    tb = min(_round_up(_cdiv(N, nblk), row_align), _round_up(block_rows, row_align))
    npad = _round_up(N, tb)
    g = npad // tb
    masked = (npad != N)

    out_shape = jax.ShapeDtypeStruct((g, 8, 128), jnp.float32)
    out_spec = pl.BlockSpec((1, 8, 128), lambda i: (i, 0, 0))
    cparams = pltpu.CompilerParams(dimension_semantics=("parallel",),
                                   vmem_limit_bytes=_VMEM_LIMIT_BYTES)

    if use_dense:
        # kron operator, transposed so local_mean = x_flat @ m_t, bf16 operand.
        m_t = jnp.kron(m_row, m_col).T.astype(jnp.bfloat16)         # (HW, HW)
        p2 = pred.reshape(N, HW)
        t2 = target.reshape(N, HW)
        if masked:
            p2 = jnp.pad(p2, ((0, npad - N), (0, 0)))
            t2 = jnp.pad(t2, ((0, npad - N), (0, 0)))
        kernel = functools.partial(_awl_dense_kernel, tb=tb, n_valid=N, masked=masked)
        partials = pl.pallas_call(
            kernel,
            out_shape=out_shape,
            grid=(g,),
            in_specs=[
                pl.BlockSpec((HW, HW), lambda i: (0, 0)),   # constant pool operator
                pl.BlockSpec((tb, HW), lambda i: (i, 0)),   # pred rows
                pl.BlockSpec((tb, HW), lambda i: (i, 0)),   # target rows
            ],
            out_specs=out_spec,
            compiler_params=cparams,
        )(m_t, p2, t2)
    else:
        mr = m_row.astype(jnp.bfloat16)
        mc = m_col.astype(jnp.bfloat16)
        p3 = pred.reshape(N, H, W)
        t3 = target.reshape(N, H, W)
        if masked:
            p3 = jnp.pad(p3, ((0, npad - N), (0, 0), (0, 0)))
            t3 = jnp.pad(t3, ((0, npad - N), (0, 0), (0, 0)))
        kernel = functools.partial(_awl_sep_kernel, tb=tb, n_valid=N, masked=masked)
        partials = pl.pallas_call(
            kernel,
            out_shape=out_shape,
            grid=(g,),
            in_specs=[
                pl.BlockSpec((H, H), lambda i: (0, 0)),        # row pool operator
                pl.BlockSpec((W, W), lambda i: (0, 0)),        # col pool operator
                pl.BlockSpec((tb, H, W), lambda i: (i, 0, 0)),  # pred images
                pl.BlockSpec((tb, H, W), lambda i: (i, 0, 0)),  # target images
            ],
            out_specs=out_spec,
            compiler_params=cparams,
        )(mr, mc, p3, t3)

    # Tiny cross-block combine in the wrapper:
    #   loss = S1/Ntot + wf * S2/S3
    sums = jnp.sum(partials[:, 0, :3].astype(jnp.float32), axis=0)
    n_elems = float(N * HW)
    return sums[0] / n_elems + weight_factor * sums[1] / sums[2]


def reference_loss(pred, target, kernel_size=KERNEL_SIZE,
                   weight_factor=WEIGHT_FACTOR):
    """Pure-JAX mirror of the PyTorch forward (for validation)."""
    pad = kernel_size // 2

    def avg_pool_reflect(x):
        xp = jnp.pad(x, ((0, 0), (0, 0), (pad, pad), (pad, pad)), mode="reflect")
        s = jax.lax.reduce_window(xp, 0.0, jax.lax.add,
                                  (1, 1, kernel_size, kernel_size),
                                  (1, 1, 1, 1), "VALID")
        return s / float(kernel_size * kernel_size)

    local_mean = avg_pool_reflect(target)
    local_var = avg_pool_reflect((target - local_mean) ** 2)
    local_std = jnp.sqrt(local_var + EPS)
    weight = 1.0 + weight_factor * (local_std / local_std.mean())
    return (jnp.abs(pred - target) * weight).mean()


if __name__ == "__main__":
    key = jax.random.PRNGKey(0)
    loss_fn = jax.jit(adaptive_weighted_loss)

    cases = [
        (2, 4, 16, 16),   # dense path, single block, no padding
        (3, 3, 16, 16),   # dense path, 2 blocks + padded tail rows (masking)
        (2, 2, 32, 32),   # separable path (HW > dense_max_hw)
    ]
    for idx, shape in enumerate(cases):
        k1, k2 = jax.random.split(jax.random.fold_in(key, idx))
        pred = jax.random.normal(k1, shape, dtype=jnp.float32)
        target = jax.random.normal(k2, shape, dtype=jnp.float32)
        loss = jax.block_until_ready(loss_fn(pred, target))
        ref = jax.block_until_ready(reference_loss(pred, target))
        assert jnp.allclose(loss, ref, rtol=1e-2, atol=1e-2), (shape, loss, ref)

    print("KERNEL_OK")
</pallas_src>

<mosaic_0001>
module attributes {stable_mosaic.version = 11 : i64} {
  func.func @_awl_dense_kernel(%arg0: i32, %arg1: memref<256x256xbf16, #tpu.memory_space<vmem>>, %arg2: memref<8x256xf32, #tpu.memory_space<vmem>>, %arg3: memref<8x256xf32, #tpu.memory_space<vmem>>, %arg4: memref<1x8x128xf32, #tpu.memory_space<vmem>>) attributes {dimension_semantics = [#tpu.dimension_semantics<parallel>], iteration_bounds = array<i64: 1>, scalar_prefetch = 0 : i64, scratch_operands = 0 : i64, tpu.core_type = #tpu.core_type<tc>, window_params = [{pipeline_mode = #tpu.pipeline_mode<synchronous>, transform_indices = @transform_0, window_bounds = array<i64: 256, 256>}, {transform_indices = @transform_1, window_bounds = array<i64: 8, 256>}, {transform_indices = @transform_2, window_bounds = array<i64: 8, 256>}, {transform_indices = @transform_3, window_bounds = array<i64: 1, 8, 128>}]} {
    %c0 = arith.constant 0 : index
    %c0_0 = arith.constant 0 : index
    %0 = vector.load %arg3[%c0, %c0_0] : memref<8x256xf32, #tpu.memory_space<vmem>>, vector<8x256xf32>
    %c0_1 = arith.constant 0 : index
    %c0_2 = arith.constant 0 : index
    %1 = vector.load %arg2[%c0_1, %c0_2] : memref<8x256xf32, #tpu.memory_space<vmem>>, vector<8x256xf32>
    %c0_3 = arith.constant 0 : index
    %c0_4 = arith.constant 0 : index
    %2 = vector.load %arg1[%c0_3, %c0_4] : memref<256x256xbf16, #tpu.memory_space<vmem>>, vector<256x256xbf16>
    %3 = arith.truncf %0 : vector<8x256xf32> to vector<8x256xbf16>
    %cst = arith.constant dense<0.000000e+00> : vector<8x256xf32>
    %4 = tpu.matmul %3, %2, %cst {dimension_numbers = #tpu.dot_dimension_numbers<[1], [0], [0], [1], [0, 0, 1, 1], [], []>} : vector<8x256xbf16>, vector<256x256xbf16>, vector<8x256xf32> -> vector<8x256xf32>
    %5 = arith.subf %0, %4 : vector<8x256xf32>
    %6 = arith.mulf %5, %5 : vector<8x256xf32>
    %7 = arith.truncf %6 : vector<8x256xf32> to vector<8x256xbf16>
    %cst_5 = arith.constant dense<0.000000e+00> : vector<8x256xf32>
    %8 = tpu.matmul %7, %2, %cst_5 {dimension_numbers = #tpu.dot_dimension_numbers<[1], [0], [0], [1], [0, 0, 1, 1], [], []>} : vector<8x256xbf16>, vector<256x256xbf16>, vector<8x256xf32> -> vector<8x256xf32>
    %cst_6 = arith.constant 0.000000e+00 : f32
    %9 = vector.broadcast %cst_6 : f32 to vector<8x256xf32>
    %10 = arith.maximumf %8, %9 : vector<8x256xf32>
    %cst_7 = arith.constant 9.99999997E-7 : f32
    %11 = vector.broadcast %cst_7 : f32 to vector<8x256xf32>
    %12 = arith.addf %10, %11 : vector<8x256xf32>
    %13 = math.sqrt %12 : vector<8x256xf32>
    %14 = arith.subf %1, %0 : vector<8x256xf32>
    %15 = math.absf %14 : vector<8x256xf32>
    %cst_8 = arith.constant dense<0.000000e+00> : vector<8xf32>
    %16 = vector.multi_reduction <add>, %15, %cst_8 [1] : vector<8x256xf32> to vector<8xf32>
    %17 = vector.shape_cast %16 : vector<8xf32> to vector<8x1xf32>
    %18 = arith.mulf %15, %13 : vector<8x256xf32>
    %cst_9 = arith.constant dense<0.000000e+00> : vector<8xf32>
    %19 = vector.multi_reduction <add>, %18, %cst_9 [1] : vector<8x256xf32> to vector<8xf32>
    %20 = vector.shape_cast %19 : vector<8xf32> to vector<8x1xf32>
    %cst_10 = arith.constant dense<0.000000e+00> : vector<8xf32>
    %21 = vector.multi_reduction <add>, %13, %cst_10 [1] : vector<8x256xf32> to vector<8xf32>
    %22 = vector.shape_cast %21 : vector<8xf32> to vector<8x1xf32>
    %23 = vector.shape_cast %17 : vector<8x1xf32> to vector<1x8x1xf32>
    %cst_11 = arith.constant dense<0.000000e+00> : vector<1xf32>
    %24 = vector.multi_reduction <add>, %23, %cst_11 [1, 2] : vector<1x8x1xf32> to vector<1xf32>
    %25 = vector.shape_cast %24 : vector<1xf32> to vector<1x1x1xf32>
    %26 = vector.extract %25[0, 0, 0] : f32 from vector<1x1x1xf32>
    %27 = vector.shape_cast %20 : vector<8x1xf32> to vector<1x8x1xf32>
    %cst_12 = arith.constant dense<0.000000e+00> : vector<1xf32>
    %28 = vector.multi_reduction <add>, %27, %cst_12 [1, 2] : vector<1x8x1xf32> to vector<1xf32>
    %29 = vector.shape_cast %28 : vector<1xf32> to vector<1x1x1xf32>
    %30 = vector.extract %29[0, 0, 0] : f32 from vector<1x1x1xf32>
    %31 = vector.shape_cast %22 : vector<8x1xf32> to vector<1x8x1xf32>
    %cst_13 = arith.constant dense<0.000000e+00> : vector<1xf32>
    %32 = vector.multi_reduction <add>, %31, %cst_13 [1, 2] : vector<1x8x1xf32> to vector<1xf32>
    %33 = vector.shape_cast %32 : vector<1xf32> to vector<1x1x1xf32>
    %34 = vector.extract %33[0, 0, 0] : f32 from vector<1x1x1xf32>
    %35 = tpu.iota {dimensions = array<i32: 2>} : vector<1x8x128xi32>
    %c0_i32 = arith.constant 0 : i32
    %36 = vector.broadcast %c0_i32 : i32 to vector<1x8x128xi32>
    %37 = arith.cmpi eq, %35, %36 : vector<1x8x128xi32>
    %c1_i32 = arith.constant 1 : i32
    %38 = vector.broadcast %c1_i32 : i32 to vector<1x8x128xi32>
    %39 = arith.cmpi eq, %35, %38 : vector<1x8x128xi32>
    %c2_i32 = arith.constant 2 : i32
    %40 = vector.broadcast %c2_i32 : i32 to vector<1x8x128xi32>
    %41 = arith.cmpi eq, %35, %40 : vector<1x8x128xi32>
    %cst_14 = arith.constant 0.000000e+00 : f32
    %42 = vector.broadcast %34 : f32 to vector<1x8x128xf32>
    %43 = vector.broadcast %cst_14 : f32 to vector<1x8x128xf32>
    %44 = arith.select %41, %42, %43 : vector<1x8x128xi1>, vector<1x8x128xf32>
    %45 = vector.broadcast %30 : f32 to vector<1x8x128xf32>
    %46 = arith.select %39, %45, %44 : vector<1x8x128xi1>, vector<1x8x128xf32>
    %47 = vector.broadcast %26 : f32 to vector<1x8x128xf32>
    %48 = arith.select %37, %47, %46 : vector<1x8x128xi1>, vector<1x8x128xf32>
    %c0_15 = arith.constant 0 : index
    %c0_16 = arith.constant 0 : index
    %c0_17 = arith.constant 0 : index
    %49 = vector.load %arg4[%c0_15, %c0_16, %c0_17] : memref<1x8x128xf32, #tpu.memory_space<vmem>>, vector<1x8x128xf32>
    tpu.vector_store %arg4[%c0_15, %c0_16, %c0_17], %48 {strides = array<i32>} : memref<1x8x128xf32, #tpu.memory_space<vmem>>, vector<1x8x128xf32>,
    return
  }
  func.func @transform_0(%arg0: i32) -> (i32, i32) {
    %c0_i32 = arith.constant 0 : i32
    %c0_i32_0 = arith.constant 0 : i32
    %c0_i32_1 = arith.constant 0 : i32
    return %c0_i32, %c0_i32_0 : i32, i32
  }
  func.func @transform_1(%arg0: i32) -> (i32, i32) {
    %c0_i32 = arith.constant 0 : i32
    %c0_i32_0 = arith.constant 0 : i32
    return %arg0, %c0_i32 : i32, i32
  }
  func.func @transform_2(%arg0: i32) -> (i32, i32) {
    %c0_i32 = arith.constant 0 : i32
    %c0_i32_0 = arith.constant 0 : i32
    return %arg0, %c0_i32 : i32, i32
  }
  func.func @transform_3(%arg0: i32) -> (i32, i32, i32) {
    %c0_i32 = arith.constant 0 : i32
    %c0_i32_0 = arith.constant 0 : i32
    %c0_i32_1 = arith.constant 0 : i32
    return %arg0, %c0_i32, %c0_i32_0 : i32, i32, i32
  }
}

</mosaic_0001>

<bundles_post_ra>
// kernel: adaptive_weighted_loss.1
= control target key start
LH: loop header
LB: loop body
LE: loop exit
PB: predicated region body
PF: predicated region fallthrough
CT: control target
= control target key end

     0   :  { %vm365_vm4 = vcmask 7168   ;;  %s917_s0 = inlined_call_operand.vmem [shape: bf16[256,256], index: 0, kind: input, shape index: {}]   ;;  %s918_s2 = inlined_call_operand.vmem [shape: f32[8,256], index: 2, kind: input, shape index: {}]   ;;  %s919_s1 = inlined_call_operand.vmem [shape: f32[8,256], index: 1, kind: input, shape index: {}]   ;;  %s920_s3 = inlined_call_operand.vmem [shape: f32[1,8,128], index: 3, kind: output, shape index: {}]  }
   0x1   :  { %v470_v0 = vld [vmem:[%s917_s0 + $0x70] sm:$0xf]  ;;  %v555_v1 = vld [vmem:[%s917_s0 + $0x74] sm:$0xf0]  ;;  %v554_v5 = vld [vmem:[%s917_s0 + $0x74] sm:$0xf] }
   0x2   :  { %v534_v2 = vld [vmem:[%s917_s0 + $0xf0] sm:$0xf]  ;;  %v611_v3 = vor.u32 %v555_v1, %v470_v0  ;;  %v571_v4 = vld [vmem:[%s917_s0 + $0xf4] sm:$0xf0]  ;;  %v472_v6 = vld [vmem:[%s917_s0 + $0x78] sm:$0xf0] }
   0x3   :  { %v622_v7 = vor.u32 %v571_v4, %v534_v2  ;;  %v624_v8 = vor.u32 %v554_v5, %v472_v6  ;;  %v570_v9 = vld [vmem:[%s917_s0 + $0xf4] sm:$0xf]  ;;  %v536_v10 = vld [vmem:[%s917_s0 + $0xf8] sm:$0xf0]  ;;  %v462_v11 = vld [vmem:[%s917_s0 + $0x60] sm:$0xf] }
   0x4   :  { %212 = vmatpush.bf16.msra.mxu0 %v611_v3  ;;  %v636_v12 = vor.u32 %v570_v9, %v536_v10  ;;  %v553_v13 = vld [vmem:[%s917_s0 + $0x64] sm:$0xf0]  ;;  %v526_v14 = vld [vmem:[%s917_s0 + $0xe0] sm:$0xf]  ;;  %v552_v18 = vld [vmem:[%s917_s0 + $0x64] sm:$0xf] }
   0x5   :  { %v569_v15 = vld [vmem:[%s917_s0 + $0xe4] sm:$0xf0]  ;;  %225 = vmatpush.bf16.msra.mxu1 %v622_v7  ;;  %238 = vmatpush.bf16.msra.mxu2 %v624_v8  ;;  %v649_v16 = vor.u32 %v553_v13, %v462_v11  ;;  %v464_v19 = vld [vmem:[%s917_s0 + $0x68] sm:$0xf0]  ;;  %v568_v20 = vld [vmem:[%s917_s0 + $0xe4] sm:$0xf] }
   0x6   :  { %v651_v17 = vor.u32 %v569_v15, %v526_v14  ;;  %251 = vmatpush.bf16.msra.mxu3 %v636_v12  ;;  %v663_v21 = vor.u32 %v552_v18, %v464_v19  ;;  %v528_v22 = vld [vmem:[%s917_s0 + $0xe8] sm:$0xf0]  ;;  %v454_v23 = vld [vmem:[%s917_s0 + $0x50] sm:$0xf]  ;;  %v551_v24 = vld [vmem:[%s917_s0 + $0x54] sm:$0xf0] }
   0x7   :  { %v674_v25 = vor.u32 %v568_v20, %v528_v22  ;;  %v518_v26 = vld [vmem:[%s917_s0 + $0xd0] sm:$0xf]  ;;  %v567_v27 = vld [vmem:[%s917_s0 + $0xd4] sm:$0xf0]  ;;  %v550_v28 = vld [vmem:[%s917_s0 + $0x54] sm:$0xf]  ;;  %v686_v29 = vor.u32 %v551_v24, %v454_v23 }
   0x8   :  { %213 = vmatpush.bf16.msra.mxu0 %v649_v16  ;;  %v456_v30 = vld [vmem:[%s917_s0 + $0x58] sm:$0xf0]  ;;  %v566_v31 = vld [vmem:[%s917_s0 + $0xd4] sm:$0xf]  ;;  %v699_v33 = vor.u32 %v567_v27, %v518_v26  ;;  %v446_v35 = vld [vmem:[%s917_s0 + $0x40] sm:$0xf] }
   0x9   :  { %v520_v32 = vld [vmem:[%s917_s0 + $0xd8] sm:$0xf0]  ;;  %226 = vmatpush.bf16.msra.mxu1 %v651_v17  ;;  %239 = vmatpush.bf16.msra.mxu2 %v663_v21  ;;  %v701_v34 = vor.u32 %v550_v28, %v456_v30  ;;  %v549_v36 = vld [vmem:[%s917_s0 + $0x44] sm:$0xf0]  ;;  %v510_v37 = vld [vmem:[%s917_s0 + $0xc0] sm:$0xf] }
   0xa   :  { %252 = vmatpush.bf16.msra.mxu3 %v674_v25  ;;  %v713_v38 = vor.u32 %v566_v31, %v520_v32  ;;  %v565_v39 = vld [vmem:[%s917_s0 + $0xc4] sm:$0xf0]  ;;  %v548_v40 = vld [vmem:[%s917_s0 + $0x44] sm:$0xf]  ;;  %v448_v41 = vld [vmem:[%s917_s0 + $0x48] sm:$0xf0]  ;;  %v731_v44 = vor.u32 %v549_v36, %v446_v35 }
   0xb   :  { %v564_v42 = vld [vmem:[%s917_s0 + $0xc4] sm:$0xf]  ;;  %v512_v43 = vld [vmem:[%s917_s0 + $0xc8] sm:$0xf0]  ;;  %v735_v45 = vor.u32 %v565_v39, %v510_v37  ;;  %v737_v46 = vor.u32 %v548_v40, %v448_v41  ;;  %v438_v47 = vld [vmem:[%s917_s0 + $0x30] sm:$0xf] }
   0xc   :  { %214 = vmatpush.bf16.msra.mxu0 %v686_v29  ;;  %v547_v48 = vld [vmem:[%s917_s0 + $0x34] sm:$0xf0]  ;;  %v502_v49 = vld [vmem:[%s917_s0 + $0xb0] sm:$0xf]  ;;  %v749_v50 = vor.u32 %v564_v42, %v512_v43  ;;  %v546_v52 = vld [vmem:[%s917_s0 + $0x34] sm:$0xf] }
   0xd   :  { %227 = vmatpush.bf16.msra.mxu1 %v699_v33  ;;  %240 = vmatpush.bf16.msra.mxu2 %v701_v34  ;;  %v563_v51 = vld [vmem:[%s917_s0 + $0xb4] sm:$0xf0]  ;;  %v440_v53 = vld [vmem:[%s917_s0 + $0x38] sm:$0xf0]  ;;  %v562_v54 = vld [vmem:[%s917_s0 + $0xb4] sm:$0xf]  ;;  %v767_v56 = vor.u32 %v547_v48, %v438_v47 }
   0xe   :  { %253 = vmatpush.bf16.msra.mxu3 %v713_v38  ;;  %v504_v55 = vld [vmem:[%s917_s0 + $0xb8] sm:$0xf0]  ;;  %v771_v57 = vor.u32 %v563_v51, %v502_v49  ;;  %v773_v58 = vor.u32 %v546_v52, %v440_v53  ;;  %v430_v59 = vld [vmem:[%s917_s0 + $0x20] sm:$0xf]  ;;  %v545_v60 = vld [vmem:[%s917_s0 + $0x24] sm:$0xf0] }
   0xf   :  { %v494_v61 = vld [vmem:[%s917_s0 + $0xa0] sm:$0xf]  ;;  %v785_v62 = vor.u32 %v562_v54, %v504_v55  ;;  %v561_v63 = vld [vmem:[%s917_s0 + $0xa4] sm:$0xf0]  ;;  %v544_v0 = vld [vmem:[%s917_s0 + $0x24] sm:$0xf]  ;;  %v803_v5 = vor.u32 %v545_v60, %v430_v59 }
  0x10   :  { %215 = vmatpush.bf16.msra.mxu0 %v731_v44  ;;  %v432_v1 = vld [vmem:[%s917_s0 + $0x28] sm:$0xf0]  ;;  %v560_v2 = vld [vmem:[%s917_s0 + $0xa4] sm:$0xf]  ;;  %v807_v6 = vor.u32 %v561_v63, %v494_v61  ;;  %v422_v10 = vld [vmem:[%s917_s0 + $0x10] sm:$0xf] }
  0x11   :  { %228 = vmatpush.bf16.msra.mxu1 %v735_v45  ;;  %241 = vmatpush.bf16.msra.mxu2 %v737_v46  ;;  %v496_v4 = vld [vmem:[%s917_s0 + $0xa8] sm:$0xf0]  ;;  %v809_v9 = vor.u32 %v544_v0, %v432_v1  ;;  %v543_v11 = vld [vmem:[%s917_s0 + $0x14] sm:$0xf0]  ;;  %v486_v13 = vld [vmem:[%s917_s0 + $0x90] sm:$0xf] }
  0x12   :  { %254 = vmatpush.bf16.msra.mxu3 %v749_v50  ;;  %v821_v14 = vor.u32 %v560_v2, %v496_v4  ;;  %v559_v15 = vld [vmem:[%s917_s0 + $0x94] sm:$0xf0]  ;;  %v542_v18 = vld [vmem:[%s917_s0 + $0x14] sm:$0xf]  ;;  %v424_v19 = vld [vmem:[%s917_s0 + $0x18] sm:$0xf0]  ;;  %v423_v23 = vor.u32 %v543_v11, %v422_v10 }
  0x13   :  { %v558_v20 = vld [vmem:[%s917_s0 + $0x94] sm:$0xf]  ;;  %v488_v22 = vld [vmem:[%s917_s0 + $0x98] sm:$0xf0]  ;;  %v487_v24 = vor.u32 %v559_v15, %v486_v13  ;;  %v427_v26 = vor.u32 %v542_v18, %v424_v19  ;;  %v414_v27 = vld [vmem:[%s917_s0] sm:$0xf] }
  0x14   :  { %216 = vmatpush.bf16.msra.mxu0 %v767_v56  ;;  %v541_v28 = vld [vmem:[%s917_s0 + $0x4] sm:$0xf0]  ;;  %v478_v30 = vld [vmem:[%s917_s0 + $0x80] sm:$0xf]  ;;  %v491_v31 = vor.u32 %v558_v20, %v488_v22  ;;  %v540_v35 = vld [vmem:[%s917_s0 + $0x4] sm:$0xf] }
  0x15   :  { %229 = vmatpush.bf16.msra.mxu1 %v771_v57  ;;  %242 = vmatpush.bf16.msra.mxu2 %v773_v58  ;;  %v557_v32 = vld [vmem:[%s917_s0 + $0x84] sm:$0xf0]  ;;  %v416_v36 = vld [vmem:[%s917_s0 + $0x8] sm:$0xf0]  ;;  %v556_v37 = vld [vmem:[%s917_s0 + $0x84] sm:$0xf]  ;;  %v415_v40 = vor.u32 %v541_v28, %v414_v27 }
  0x16   :  { %255 = vmatpush.bf16.msra.mxu3 %v785_v62  ;;  %v480_v39 = vld [vmem:[%s917_s0 + $0x88] sm:$0xf0]  ;;  %v869_v41 = vld [vmem:[%s918_s2] sm:$0xff]  ;;  %v479_v42 = vor.u32 %v557_v32, %v478_v30  ;;  %v419_v43 = vor.u32 %v540_v35, %v416_v36 }
  0x17   :  { %v874_v47 = vld [vmem:[%s918_s2 + $0x8] sm:$0xff]  ;;  %v483_v48 = vor.u32 %v556_v37, %v480_v39  ;;  %v50_v49 = vpack.c.bf16 %v869_v41, %v869_v41  ;;  %v16_v52 = vld [vmem:[%s919_s1] sm:$0xff] }
  0x18   :  { %217 = vmatpush.bf16.msra.mxu0 %v803_v5  ;;  %v51_v51 = vpack.c.bf16 %v874_v47, %v874_v47  ;;  %v17_v53 = vld [vmem:[%s919_s1 + $0x8] sm:$0xff]  ;;  %v350_v54 = vsub.f32 %v16_v52, %v869_v41 }
  0x19   :  { %230 = vmatpush.bf16.msra.mxu1 %v807_v6  ;;  %243 = vmatpush.bf16.msra.mxu2 %v809_v9  ;;  %v351_v55 = vsub.f32 %v17_v53, %v874_v47 }
  0x1a   :  { %256 = vmatpush.bf16.msra.mxu3 %v821_v14 }
  0x1c   :  { %218 = vmatpush.bf16.msra.mxu0 %v423_v23 }
  0x1d   :  { %231 = vmatpush.bf16.msra.mxu1 %v487_v24  ;;  %244 = vmatpush.bf16.msra.mxu2 %v427_v26 }
  0x1e   :  { %257 = vmatpush.bf16.msra.mxu3 %v491_v31 }
  0x20   :  { %219 = vmatpush.bf16.msra.mxu0 %v415_v40 }
  0x21   :  { %232 = vmatpush.bf16.msra.mxu1 %v479_v42  ;;  %245 = vmatpush.bf16.msra.mxu2 %v419_v43 }
  0x22   :  { %258 = vmatpush.bf16.msra.mxu3 %v483_v48 }
  0x23   :  { %220 = vmatmul.bf16.vlgmr.msra.gmra.mxu0 %v50_v49 }
  0x24   :  { %270 = vmatpush.bf16.msrb.mxu0 %v611_v3  ;;  %233 = vmatmul.bf16.vlgmr.msra.gmra.mxu1 %v51_v51 }
  0x25   :  { %296 = vmatpush.bf16.msrb.mxu2 %v624_v8  ;;  %259 = vmatmul.bf16.vlgmr.msra.gmra.mxu3 %v51_v51 }
  0x26   :  { %246 = vmatmul.bf16.vlgmr.msra.gmra.mxu2 %v50_v49  ;;  %283 = vmatpush.bf16.msrb.mxu1 %v622_v7 }
  0x27   :  { %309 = vmatpush.bf16.msrb.mxu3 %v636_v12 }
  0x28   :  { %271 = vmatpush.bf16.msrb.mxu0 %v649_v16 }
  0x29   :  { %297 = vmatpush.bf16.msrb.mxu2 %v663_v21 }
  0x2a   :  { %284 = vmatpush.bf16.msrb.mxu1 %v651_v17 }
  0x2b   :  { %310 = vmatpush.bf16.msrb.mxu3 %v674_v25 }
  0x2c   :  { %272 = vmatpush.bf16.msrb.mxu0 %v686_v29 }
  0x2d   :  { %298 = vmatpush.bf16.msrb.mxu2 %v701_v34 }
  0x2e   :  { %285 = vmatpush.bf16.msrb.mxu1 %v699_v33 }
  0x2f   :  { %311 = vmatpush.bf16.msrb.mxu3 %v713_v38 }
  0x30   :  { %273 = vmatpush.bf16.msrb.mxu0 %v731_v44 }
  0x31   :  { %299 = vmatpush.bf16.msrb.mxu2 %v737_v46 }
  0x32   :  { %286 = vmatpush.bf16.msrb.mxu1 %v735_v45 }
  0x33   :  { %312 = vmatpush.bf16.msrb.mxu3 %v749_v50 }
  0x34   :  { %274 = vmatpush.bf16.msrb.mxu0 %v767_v56  ;;  %v352_v56 = vand.u32 2147483647, %v350_v54 }
  0x35   :  { %300 = vmatpush.bf16.msrb.mxu2 %v773_v58 }
  0x36   :  { %287 = vmatpush.bf16.msrb.mxu1 %v771_v57  ;;  %v353_v57 = vand.u32 2147483647, %v351_v55 }
  0x37   :  { %313 = vmatpush.bf16.msrb.mxu3 %v785_v62 }
  0x38   :  { %275 = vmatpush.bf16.msrb.mxu0 %v803_v5  ;;  %v354_v58 = vadd.f32 %v353_v57, %v352_v56 }
  0x39   :  { %301 = vmatpush.bf16.msrb.mxu2 %v809_v9 }
  0x3a   :  { %288 = vmatpush.bf16.msrb.mxu1 %v807_v6  ;;  %355 = vadd.xlane.f32.xlu0 %v354_v58 }
  0x3b   :  { %314 = vmatpush.bf16.msrb.mxu3 %v821_v14 }
  0x3c   :  { %276 = vmatpush.bf16.msrb.mxu0 %v423_v23 }
  0x3d   :  { %302 = vmatpush.bf16.msrb.mxu2 %v427_v26 }
  0x3e   :  { %289 = vmatpush.bf16.msrb.mxu1 %v487_v24 }
  0x3f   :  { %315 = vmatpush.bf16.msrb.mxu3 %v491_v31 }
  0x40   :  { %277 = vmatpush.bf16.msrb.mxu0 %v415_v40 }
  0x41   :  { %303 = vmatpush.bf16.msrb.mxu2 %v419_v43 }
  0x42   :  { %290 = vmatpush.bf16.msrb.mxu1 %v479_v42 }
  0x43   :  { %316 = vmatpush.bf16.msrb.mxu3 %v483_v48 }
  0xa0   :  { %v221_v3 = vpop.f32.mrf.mxu0 }
  0xa1   :  { %v234_v7 = vpop.f32.mrf.mxu1 }
  0xa2   :  { %v235_v8 = vadd.f32 %v234_v7, %v221_v3 }
  0xa4   :  { %v264_v12 = vsub.f32 %v869_v41, %v235_v8 }
  0xa6   :  { %v266_v16 = vmul.f32 %v264_v12, %v264_v12 }
  0xa8   :  { %v268_v21 = vpack.c.bf16 %v266_v16, %v266_v16  ;;  %v260_v25 = vpop.f32.mrf.mxu3  ;;  %v223_v29 = vpop.f32.mrf.mxu0 }
  0xa9   :  { %v247_v17 = vpop.f32.mrf.mxu2  ;;  %v236_v34 = vpop.f32.mrf.mxu1 }
  0xaa   :  { %v261_v33 = vadd.f32 %v260_v25, %v247_v17  ;;  %278 = vmatmul.bf16.vlgmr.msrb.gmra.mxu0 %v268_v21  ;;  %304 = vmatmul.bf16.vlgmr.msrb.gmra.mxu2 %v268_v21 }
  0xac   :  { %v265_v38 = vsub.f32 %v874_v47, %v261_v33 }
  0xad   :  { %v356_v48 = vpop.xlane.xlu0 %355 }
  0xae   :  { %v267_v44 = vmul.f32 %v265_v38, %v265_v38  ;;  %v366_v49 = vsel %vm365_vm4, %v356_v48, 0.0 }
  0xb0   :  { %v269_v45 = vpack.c.bf16 %v267_v44, %v267_v44  ;;  %v262_v50 = vpop.f32.mrf.mxu3 }
  0xb1   :  { %v249_v46 = vpop.f32.mrf.mxu2 }
  0xb2   :  { %291 = vmatmul.bf16.vlgmr.msrb.gmra.mxu1 %v269_v45  ;;  %317 = vmatmul.bf16.vlgmr.msrb.gmra.mxu3 %v269_v45 }
 0x127   :  { %v279_v59 = vpop.f32.mrf.mxu0 }
 0x12d   :  { %v305_v60 = vpop.f32.mrf.mxu2 }
 0x12f   :  { %v292_v61 = vpop.f32.mrf.mxu1  ;;  %v281_v63 = vpop.f32.mrf.mxu0 }
 0x130   :  { %v293_v62 = vadd.f32 %v292_v61, %v279_v59 }
 0x132   :  { %v322_v0 = vmax.f32 %v293_v62, 0.0 }
 0x134   :  { %v324_v1 = vadd.f32 1e-06, %v322_v0 }
 0x135   :  { %v318_v2 = vpop.f32.mrf.mxu3  ;;  %v307_v5 = vpop.f32.mrf.mxu2 }
 0x136   :  { %v319_v4 = vadd.f32 %v318_v2, %v305_v60  ;;  %578 = vrsqrt.f32 %v324_v1  ;;  %vm333_vm0 = vcmp.eq.f32.partialorder %v324_v1, inf  ;;  %v336_v32 = vand.u32 2147483648, %v324_v1 }
 0x137   :  { %v294_v6 = vpop.f32.mrf.mxu1  ;;  %vm335_vm1 = vcmp.eq.f32.partialorder %v324_v1, 0.0  ;;  %v396_v60 = vlaneseq }
 0x138   :  { %v323_v9 = vmax.f32 %v319_v4, 0.0 }
 0x139   :  { %v397_v61 = vand.u32 127, %v396_v60 }
 0x13a   :  { %v325_v10 = vadd.f32 1e-06, %v323_v9 }
 0x13b   :  { %vm400_vm5 = vcmp.eq.s32.totalorder %v397_v61, 2  ;;  %vm399_vm6 = vcmp.eq.s32.totalorder %v397_v61, 1  ;;  %vm398_vm7 = vcmp.eq.s32.totalorder %v397_v61, 0 }
 0x13c   :  { %v579_v11 = vpop.eup %578  ;;  %580 = vrsqrt.f32 %v325_v10  ;;  %vm345_vm2 = vcmp.eq.f32.partialorder %v325_v10, inf  ;;  %v348_v37 = vand.u32 2147483648, %v325_v10  ;;  %vm347_vm3 = vcmp.eq.f32.partialorder %v325_v10, 0.0 }
 0x13d   :  { %v320_v13 = vpop.f32.mrf.mxu3  ;;  %v327_v14 = vmul.f32 %v579_v11, %v324_v1 }
 0x13f   :  { %v328_v15 = vmul.f32 %v579_v11, %v327_v14 }
 0x141   :  { %v329_v18 = vmul.f32 0.5, %v328_v15 }
 0x142   :  { %v581_v19 = vpop.eup %580 }
 0x143   :  { %v330_v20 = vsub.f32 1.5, %v329_v18  ;;  %v339_v22 = vmul.f32 %v581_v19, %v325_v10 }
 0x145   :  { %v331_v23 = vmul.f32 %v579_v11, %v330_v20  ;;  %v340_v24 = vmul.f32 %v581_v19, %v339_v22 }
 0x147   :  { %v332_v26 = vmul.f32 %v331_v23, %v324_v1  ;;  %v341_v27 = vmul.f32 0.5, %v340_v24 }
 0x149   :  { %v342_v28 = vsub.f32 1.5, %v341_v27  ;;  %v334_v30 = vsel %vm333_vm0, %v324_v1, %v332_v26 }
 0x14a   :  { %v337_v36 = vsel %vm335_vm1, %v336_v32, %v334_v30 }
 0x14b   :  { %v343_v31 = vmul.f32 %v581_v19, %v342_v28  ;;  %v357_v41 = vmul.f32 %v352_v56, %v337_v36 }
 0x14d   :  { %v344_v35 = vmul.f32 %v343_v31, %v325_v10 }
 0x14f   :  { %v346_v39 = vsel %vm345_vm2, %v325_v10, %v344_v35 }
 0x150   :  { %v349_v40 = vsel %vm347_vm3, %v348_v37, %v346_v39 }
 0x151   :  { %v362_v42 = vadd.f32 %v349_v40, %v337_v36  ;;  %v358_v43 = vmul.f32 %v353_v57, %v349_v40 }
 0x153   :  { %363 = vadd.xlane.f32.xlu1 %v362_v42  ;;  %v359_v47 = vadd.f32 %v358_v43, %v357_v41 }
 0x155   :  { %360 = vadd.xlane.f32.xlu0 %v359_v47 }
 0x15b   :  { %367 = vadd.xlane.f32.xlu1 %v366_v49 }
 0x1c6   :  { %v364_v7 = vpop.xlane.xlu1 %363 }
 0x1c7   :  { %v386_v8 = vsel %vm365_vm4, %v364_v7, 0.0 }
 0x1c8   :  { %v361_v51 = vpop.xlane.xlu0 %360 }
 0x1c9   :  { %v376_v3 = vsel %vm365_vm4, %v361_v51, 0.0 }
 0x1ca   :  { %377 = vadd.xlane.f32.xlu2 %v376_v3 }
 0x1ce   :  { %v368_v12 = vpop.xlane.xlu1 %367 }
 0x1cf   :  { %v369_v16 = vrot.slane %v368_v12, 4 }
 0x1d1   :  { %v370_v17 = vadd.f32 %v369_v16, %v368_v12 }
 0x1d2   :  { %387 = vadd.xlane.f32.xlu2 %v386_v8 }
 0x1d3   :  { %v371_v21 = vrot.slane %v370_v17, 2 }
 0x1d5   :  { %v372_v25 = vadd.f32 %v371_v21, %v370_v17 }
 0x1d7   :  { %v373_v29 = vrot.slane %v372_v25, 1 }
 0x1d9   :  { %v374_v33 = vadd.f32 %v373_v29, %v372_v25 }
 0x1db   :  { %572 = vpush %v374_v33 }
 0x20c   :  { %s573_s1 = spop %572 }
 0x20d   :  { %v405_v1 = vstv %s573_s1 }
 0x23d   :  { %v378_v34 = vpop.xlane.xlu2 %377 }
 0x23e   :  { %v379_v38 = vrot.slane %v378_v34, 4 }
 0x240   :  { %v380_v44 = vadd.f32 %v379_v38, %v378_v34 }
 0x242   :  { %v381_v45 = vrot.slane %v380_v44, 2 }
 0x244   :  { %v382_v46 = vadd.f32 %v381_v45, %v380_v44 }
 0x245   :  { %v388_v50 = vpop.xlane.xlu2 %387 }
 0x246   :  { %v389_v52 = vrot.slane %v388_v50, 4  ;;  %v383_v53 = vrot.slane %v382_v46, 1 }
 0x248   :  { %v390_v54 = vadd.f32 %v389_v52, %v388_v50  ;;  %v384_v55 = vadd.f32 %v383_v53, %v382_v46 }
 0x24a   :  { %v391_v56 = vrot.slane %v390_v54, 2  ;;  %574 = vpush %v384_v55 }
 0x24c   :  { %v392_v57 = vadd.f32 %v391_v56, %v390_v54 }
 0x24e   :  { %v393_v58 = vrot.slane %v392_v57, 1 }
 0x250   :  { %v394_v59 = vadd.f32 %v393_v58, %v392_v57 }
 0x252   :  { %576 = vpush %v394_v59 }
 0x27b   :  { %s575_s11 = spop %574 }
 0x27c   :  { %v403_v63 = vstv %s575_s11 }
 0x283   :  { %s577_s12 = spop %576 }
 0x284   :  { %v401_v62 = vstv %s577_s12 }
 0x285   :  { %v402_v0 = vsel %vm400_vm5, %v401_v62, 0.0 }
 0x286   :  { %v404_v2 = vsel %vm399_vm6, %v403_v63, %v402_v0 }
 0x287   :  { %v406_v4 = vsel %vm398_vm7, %v405_v1, %v404_v2 }
 0x288   :  { %407 = vst [vmem:[%s920_s3] sm:$0xff] %v406_v4 }

</bundles_post_ra>
